<compile_context>
chip_gen: v5e
topology: v5e:2x2
jax: 0.10.0
libtpu: 0.0.40
codegen_flags: <defaults>
</compile_context>

<pallas_src>
import jax
import jax.numpy as jnp
from jax.experimental import pallas as pl
from jax.experimental.pallas import tpu as pltpu


def _round_up(n: int, m: int) -> int:
    return ((n + m - 1) // m) * m


def qnetwork_kernel(slopes_ref,                      # SMEM (4,) f32 PReLU slopes
                    x_ref,                           # VMEM (TB, in_dim)
                    w1_ref, b1_ref,
                    w2_ref, b2_ref,
                    w3_ref, b3_ref,
                    w4_ref, b4_ref,
                    w5_ref, b5_ref,                  # VMEM (H, out_pad), (1, out_pad)
                    o_ref):                          # VMEM (TB, out_pad)
    def hidden_layer(h, w_ref, b_ref, slope_idx):
        h = jnp.dot(h, w_ref[...], preferred_element_type=jnp.float32) + b_ref[...]
        a = slopes_ref[slope_idx]                    # scalar read from SMEM
        return jnp.where(h >= 0, h, a * h)           # PReLU (num_parameters=1)

    h = x_ref[...]                                   # already f32; no redundant cast
    h = hidden_layer(h, w1_ref, b1_ref, 0)
    h = hidden_layer(h, w2_ref, b2_ref, 1)
    h = hidden_layer(h, w3_ref, b3_ref, 2)
    h = hidden_layer(h, w4_ref, b4_ref, 3)
    out = jnp.dot(h, w5_ref[...], preferred_element_type=jnp.float32) + b5_ref[...]
    o_ref[...] = out.astype(o_ref.dtype)             # lane-dense (padded to 128) store


def qnetwork_forward(x, params, *, block_b=128):
    """x: [B, input_dim] float32. params: dict of weights (see init_params)."""
    B, in_dim = x.shape
    hidden = params["w1"].shape[1]
    out_dim = params["w5"].shape[1]

    # ---- lane-dense output: pad final layer's output features to 128 lanes ----
    out_pad = _round_up(out_dim, 128)
    w5, b5 = params["w5"], params["b5"]
    if out_pad != out_dim:
        w5 = jnp.pad(w5, ((0, 0), (0, out_pad - out_dim)))
        b5 = jnp.pad(b5, ((0, 0), (0, out_pad - out_dim)))

    # ---- batch tiling: fill MXU sublanes, pad batch to a tile multiple ----
    tb = min(block_b, _round_up(B, 8))
    b_pad = _round_up(B, tb)
    if b_pad != B:
        x = jnp.pad(x, ((0, b_pad - B), (0, 0)))
    grid = (b_pad // tb,)

    # PReLU slopes packed into one small SMEM array (scalar path).
    slopes = jnp.concatenate(
        [params[f"a{i}"].reshape(-1) for i in range(1, 5)]).astype(jnp.float32)

    def resident(shape):
        # Constant index_map -> block DMA'd once, stays resident in VMEM across grid.
        return pl.BlockSpec(shape, lambda i, _n=len(shape): (0,) * _n)

    in_specs = [
        pl.BlockSpec(memory_space=pltpu.MemorySpace.SMEM),     # slopes (scalar path)
        pl.BlockSpec((tb, in_dim), lambda i: (i, 0)),          # x batch tile
        resident(params["w1"].shape), resident(params["b1"].shape),
        resident(params["w2"].shape), resident(params["b2"].shape),
        resident(params["w3"].shape), resident(params["b3"].shape),
        resident(params["w4"].shape), resident(params["b4"].shape),
        resident(w5.shape), resident(b5.shape),
    ]
    out_specs = pl.BlockSpec((tb, out_pad), lambda i: (i, 0))

    flops = 2 * b_pad * (in_dim * hidden + 3 * hidden * hidden + hidden * out_pad)
    bytes_accessed = 4 * (
        b_pad * in_dim + b_pad * out_pad
        + in_dim * hidden + 3 * hidden * hidden + hidden * out_pad
        + 4 * hidden + out_pad + 4
    )

    out = pl.pallas_call(
        qnetwork_kernel,
        out_shape=jax.ShapeDtypeStruct((b_pad, out_pad), jnp.float32),
        grid=grid,
        in_specs=in_specs,
        out_specs=out_specs,
        compiler_params=pltpu.CompilerParams(
            dimension_semantics=("parallel",),     # v7x: shard batch grid across 2 TCs
        ),
        cost_estimate=pl.CostEstimate(
            flops=flops, transcendentals=0, bytes_accessed=bytes_accessed),
    )(slopes, x,
      params["w1"], params["b1"],
      params["w2"], params["b2"],
      params["w3"], params["b3"],
      params["w4"], params["b4"],
      w5, b5)

    # Slice off batch padding and the zero-padded output columns.
    return out[:B, :out_dim]


def init_params(key, input_dim, output_dim, hidden_dim):
    """Deterministic synthetic init (PyTorch-Linear-style uniform bounds)."""
    def linear(key, fan_in, fan_out):
        kw, kb = jax.random.split(key)
        bound = 1.0 / (fan_in ** 0.5)
        # stored as (in, out) so the kernel computes x @ W + b
        w = jax.random.uniform(kw, (fan_in, fan_out), jnp.float32, -bound, bound)
        b = jax.random.uniform(kb, (1, fan_out), jnp.float32, -bound, bound)
        return w, b

    keys = jax.random.split(key, 5)
    w1, b1 = linear(keys[0], input_dim, hidden_dim)
    w2, b2 = linear(keys[1], hidden_dim, hidden_dim)
    w3, b3 = linear(keys[2], hidden_dim, hidden_dim)
    w4, b4 = linear(keys[3], hidden_dim, hidden_dim)
    w5, b5 = linear(keys[4], hidden_dim, output_dim)

    # PReLU slopes, PyTorch default init = 0.25 (num_parameters=1)
    a = jnp.full((1, 1), 0.25, jnp.float32)
    return {
        "w1": w1, "b1": b1, "a1": a,
        "w2": w2, "b2": b2, "a2": a,
        "w3": w3, "b3": b3, "a3": a,
        "w4": w4, "b4": b4, "a4": a,
        "w5": w5, "b5": b5,
    }


def reference_forward(x, p):
    """Pure-JAX reference matching the PyTorch forward."""
    def prelu(h, a):
        return jnp.where(h >= 0, h, a * h)
    h = prelu(x @ p["w1"] + p["b1"], p["a1"][0, 0])
    h = prelu(h @ p["w2"] + p["b2"], p["a2"][0, 0])
    h = prelu(h @ p["w3"] + p["b3"], p["a3"][0, 0])
    h = prelu(h @ p["w4"] + p["b4"], p["a4"][0, 0])
    return h @ p["w5"] + p["b5"]


if __name__ == "__main__":
    key = jax.random.PRNGKey(0)
    k_param, k_x, k_x2 = jax.random.split(key, 3)

    batch = 8
    input_dim = 16
    hidden_dim = 32
    output_dim = 4

    params = init_params(k_param, input_dim, output_dim, hidden_dim)

    # Small-batch check (single grid step, tb = 8).
    x = jax.random.normal(k_x, (batch, input_dim), jnp.float32)
    out = jax.block_until_ready(qnetwork_forward(x, params))
    ref = reference_forward(x, params)
    assert out.shape == (batch, output_dim)
    assert jnp.allclose(out, ref, atol=1e-5, rtol=1e-5), "mismatch vs JAX reference"

    # Larger-batch check exercising the pipelined grid (>1 tile) and batch padding.
    x2 = jax.random.normal(k_x2, (200, input_dim), jnp.float32)
    out2 = jax.block_until_ready(qnetwork_forward(x2, params))
    ref2 = reference_forward(x2, params)
    assert out2.shape == (200, output_dim)
    assert jnp.allclose(out2, ref2, atol=1e-5, rtol=1e-5), "mismatch vs JAX reference (gridded)"

    print("KERNEL_OK")
</pallas_src>

<mosaic_0001>
module attributes {stable_mosaic.version = 11 : i64} {
  func.func @qnetwork_kernel(%arg0: i32, %arg1: memref<4xf32, #tpu.memory_space<smem>>, %arg2: memref<8x16xf32, #tpu.memory_space<vmem>>, %arg3: memref<16x32xf32, #tpu.memory_space<vmem>>, %arg4: memref<1x32xf32, #tpu.memory_space<vmem>>, %arg5: memref<32x32xf32, #tpu.memory_space<vmem>>, %arg6: memref<1x32xf32, #tpu.memory_space<vmem>>, %arg7: memref<32x32xf32, #tpu.memory_space<vmem>>, %arg8: memref<1x32xf32, #tpu.memory_space<vmem>>, %arg9: memref<32x32xf32, #tpu.memory_space<vmem>>, %arg10: memref<1x32xf32, #tpu.memory_space<vmem>>, %arg11: memref<32x128xf32, #tpu.memory_space<vmem>>, %arg12: memref<1x128xf32, #tpu.memory_space<vmem>>, %arg13: memref<8x128xf32, #tpu.memory_space<vmem>>) attributes {dimension_semantics = [#tpu.dimension_semantics<parallel>], iteration_bounds = array<i64: 1>, scalar_prefetch = 0 : i64, scratch_operands = 0 : i64, tpu.core_type = #tpu.core_type<tc>, window_params = [{transform_indices = @transform_0, window_bounds = array<i64: 4>}, {transform_indices = @transform_1, window_bounds = array<i64: 8, 16>}, {pipeline_mode = #tpu.pipeline_mode<synchronous>, transform_indices = @transform_2, window_bounds = array<i64: 16, 32>}, {pipeline_mode = #tpu.pipeline_mode<synchronous>, transform_indices = @transform_3, window_bounds = array<i64: 1, 32>}, {pipeline_mode = #tpu.pipeline_mode<synchronous>, transform_indices = @transform_4, window_bounds = array<i64: 32, 32>}, {pipeline_mode = #tpu.pipeline_mode<synchronous>, transform_indices = @transform_5, window_bounds = array<i64: 1, 32>}, {pipeline_mode = #tpu.pipeline_mode<synchronous>, transform_indices = @transform_6, window_bounds = array<i64: 32, 32>}, {pipeline_mode = #tpu.pipeline_mode<synchronous>, transform_indices = @transform_7, window_bounds = array<i64: 1, 32>}, {pipeline_mode = #tpu.pipeline_mode<synchronous>, transform_indices = @transform_8, window_bounds = array<i64: 32, 32>}, {pipeline_mode = #tpu.pipeline_mode<synchronous>, transform_indices = @transform_9, window_bounds = array<i64: 1, 32>}, {pipeline_mode = #tpu.pipeline_mode<synchronous>, transform_indices = @transform_10, window_bounds = array<i64: 32, 128>}, {pipeline_mode = #tpu.pipeline_mode<synchronous>, transform_indices = @transform_11, window_bounds = array<i64: 1, 128>}, {transform_indices = @transform_12, window_bounds = array<i64: 8, 128>}]} {
    %c0 = arith.constant 0 : index
    %c0_0 = arith.constant 0 : index
    %0 = vector.load %arg2[%c0, %c0_0] : memref<8x16xf32, #tpu.memory_space<vmem>>, vector<8x16xf32>
    %c0_1 = arith.constant 0 : index
    %c0_2 = arith.constant 0 : index
    %1 = vector.load %arg3[%c0_1, %c0_2] : memref<16x32xf32, #tpu.memory_space<vmem>>, vector<16x32xf32>
    %cst = arith.constant dense<0.000000e+00> : vector<8x32xf32>
    %2 = tpu.matmul %0, %1, %cst {dimension_numbers = #tpu.dot_dimension_numbers<[1], [0], [0], [1], [0, 0, 1, 1], [], []>} : vector<8x16xf32>, vector<16x32xf32>, vector<8x32xf32> -> vector<8x32xf32>
    %c0_3 = arith.constant 0 : index
    %c0_4 = arith.constant 0 : index
    %3 = vector.load %arg4[%c0_3, %c0_4] : memref<1x32xf32, #tpu.memory_space<vmem>>, vector<1x32xf32>
    %4 = vector.broadcast %3 : vector<1x32xf32> to vector<8x32xf32>
    %5 = arith.addf %2, %4 : vector<8x32xf32>
    %c0_5 = arith.constant 0 : index
    %6 = memref.load %arg1[%c0_5] : memref<4xf32, #tpu.memory_space<smem>>
    %cst_6 = arith.constant 0.000000e+00 : f32
    %7 = vector.broadcast %cst_6 : f32 to vector<8x32xf32>
    %8 = arith.cmpf oge, %5, %7 : vector<8x32xf32>
    %9 = vector.broadcast %6 : f32 to vector<8x32xf32>
    %10 = arith.mulf %9, %5 : vector<8x32xf32>
    %11 = arith.select %8, %5, %10 : vector<8x32xi1>, vector<8x32xf32>
    %c0_7 = arith.constant 0 : index
    %c0_8 = arith.constant 0 : index
    %12 = vector.load %arg5[%c0_7, %c0_8] : memref<32x32xf32, #tpu.memory_space<vmem>>, vector<32x32xf32>
    %cst_9 = arith.constant dense<0.000000e+00> : vector<8x32xf32>
    %13 = tpu.matmul %11, %12, %cst_9 {dimension_numbers = #tpu.dot_dimension_numbers<[1], [0], [0], [1], [0, 0, 1, 1], [], []>} : vector<8x32xf32>, vector<32x32xf32>, vector<8x32xf32> -> vector<8x32xf32>
    %c0_10 = arith.constant 0 : index
    %c0_11 = arith.constant 0 : index
    %14 = vector.load %arg6[%c0_10, %c0_11] : memref<1x32xf32, #tpu.memory_space<vmem>>, vector<1x32xf32>
    %15 = vector.broadcast %14 : vector<1x32xf32> to vector<8x32xf32>
    %16 = arith.addf %13, %15 : vector<8x32xf32>
    %c1 = arith.constant 1 : index
    %17 = memref.load %arg1[%c1] : memref<4xf32, #tpu.memory_space<smem>>
    %cst_12 = arith.constant 0.000000e+00 : f32
    %18 = vector.broadcast %cst_12 : f32 to vector<8x32xf32>
    %19 = arith.cmpf oge, %16, %18 : vector<8x32xf32>
    %20 = vector.broadcast %17 : f32 to vector<8x32xf32>
    %21 = arith.mulf %20, %16 : vector<8x32xf32>
    %22 = arith.select %19, %16, %21 : vector<8x32xi1>, vector<8x32xf32>
    %c0_13 = arith.constant 0 : index
    %c0_14 = arith.constant 0 : index
    %23 = vector.load %arg7[%c0_13, %c0_14] : memref<32x32xf32, #tpu.memory_space<vmem>>, vector<32x32xf32>
    %cst_15 = arith.constant dense<0.000000e+00> : vector<8x32xf32>
    %24 = tpu.matmul %22, %23, %cst_15 {dimension_numbers = #tpu.dot_dimension_numbers<[1], [0], [0], [1], [0, 0, 1, 1], [], []>} : vector<8x32xf32>, vector<32x32xf32>, vector<8x32xf32> -> vector<8x32xf32>
    %c0_16 = arith.constant 0 : index
    %c0_17 = arith.constant 0 : index
    %25 = vector.load %arg8[%c0_16, %c0_17] : memref<1x32xf32, #tpu.memory_space<vmem>>, vector<1x32xf32>
    %26 = vector.broadcast %25 : vector<1x32xf32> to vector<8x32xf32>
    %27 = arith.addf %24, %26 : vector<8x32xf32>
    %c2 = arith.constant 2 : index
    %28 = memref.load %arg1[%c2] : memref<4xf32, #tpu.memory_space<smem>>
    %cst_18 = arith.constant 0.000000e+00 : f32
    %29 = vector.broadcast %cst_18 : f32 to vector<8x32xf32>
    %30 = arith.cmpf oge, %27, %29 : vector<8x32xf32>
    %31 = vector.broadcast %28 : f32 to vector<8x32xf32>
    %32 = arith.mulf %31, %27 : vector<8x32xf32>
    %33 = arith.select %30, %27, %32 : vector<8x32xi1>, vector<8x32xf32>
    %c0_19 = arith.constant 0 : index
    %c0_20 = arith.constant 0 : index
    %34 = vector.load %arg9[%c0_19, %c0_20] : memref<32x32xf32, #tpu.memory_space<vmem>>, vector<32x32xf32>
    %cst_21 = arith.constant dense<0.000000e+00> : vector<8x32xf32>
    %35 = tpu.matmul %33, %34, %cst_21 {dimension_numbers = #tpu.dot_dimension_numbers<[1], [0], [0], [1], [0, 0, 1, 1], [], []>} : vector<8x32xf32>, vector<32x32xf32>, vector<8x32xf32> -> vector<8x32xf32>
    %c0_22 = arith.constant 0 : index
    %c0_23 = arith.constant 0 : index
    %36 = vector.load %arg10[%c0_22, %c0_23] : memref<1x32xf32, #tpu.memory_space<vmem>>, vector<1x32xf32>
    %37 = vector.broadcast %36 : vector<1x32xf32> to vector<8x32xf32>
    %38 = arith.addf %35, %37 : vector<8x32xf32>
    %c3 = arith.constant 3 : index
    %39 = memref.load %arg1[%c3] : memref<4xf32, #tpu.memory_space<smem>>
    %cst_24 = arith.constant 0.000000e+00 : f32
    %40 = vector.broadcast %cst_24 : f32 to vector<8x32xf32>
    %41 = arith.cmpf oge, %38, %40 : vector<8x32xf32>
    %42 = vector.broadcast %39 : f32 to vector<8x32xf32>
    %43 = arith.mulf %42, %38 : vector<8x32xf32>
    %44 = arith.select %41, %38, %43 : vector<8x32xi1>, vector<8x32xf32>
    %c0_25 = arith.constant 0 : index
    %c0_26 = arith.constant 0 : index
    %45 = vector.load %arg11[%c0_25, %c0_26] : memref<32x128xf32, #tpu.memory_space<vmem>>, vector<32x128xf32>
    %cst_27 = arith.constant dense<0.000000e+00> : vector<8x128xf32>
    %46 = tpu.matmul %44, %45, %cst_27 {dimension_numbers = #tpu.dot_dimension_numbers<[1], [0], [0], [1], [0, 0, 1, 1], [], []>} : vector<8x32xf32>, vector<32x128xf32>, vector<8x128xf32> -> vector<8x128xf32>
    %c0_28 = arith.constant 0 : index
    %c0_29 = arith.constant 0 : index
    %47 = vector.load %arg12[%c0_28, %c0_29] : memref<1x128xf32, #tpu.memory_space<vmem>>, vector<1x128xf32>
    %48 = vector.broadcast %47 : vector<1x128xf32> to vector<8x128xf32>
    %49 = arith.addf %46, %48 : vector<8x128xf32>
    %c0_30 = arith.constant 0 : index
    %c0_31 = arith.constant 0 : index
    %50 = vector.load %arg13[%c0_30, %c0_31] : memref<8x128xf32, #tpu.memory_space<vmem>>, vector<8x128xf32>
    tpu.vector_store %arg13[%c0_30, %c0_31], %49 {strides = array<i32>} : memref<8x128xf32, #tpu.memory_space<vmem>>, vector<8x128xf32>,
    return
  }
  func.func @transform_0(%arg0: i32) -> i32 {
    %c0_i32 = arith.constant 0 : i32
    %c0_i32_0 = arith.constant 0 : i32
    return %c0_i32 : i32
  }
  func.func @transform_1(%arg0: i32) -> (i32, i32) {
    %c0_i32 = arith.constant 0 : i32
    %c0_i32_0 = arith.constant 0 : i32
    return %arg0, %c0_i32 : i32, i32
  }
  func.func @transform_2(%arg0: i32) -> (i32, i32) {
    %c0_i32 = arith.constant 0 : i32
    %c0_i32_0 = arith.constant 0 : i32
    %c0_i32_1 = arith.constant 0 : i32
    return %c0_i32, %c0_i32_0 : i32, i32
  }
  func.func @transform_3(%arg0: i32) -> (i32, i32) {
    %c0_i32 = arith.constant 0 : i32
    %c0_i32_0 = arith.constant 0 : i32
    %c0_i32_1 = arith.constant 0 : i32
    return %c0_i32, %c0_i32_0 : i32, i32
  }
  func.func @transform_4(%arg0: i32) -> (i32, i32) {
    %c0_i32 = arith.constant 0 : i32
    %c0_i32_0 = arith.constant 0 : i32
    %c0_i32_1 = arith.constant 0 : i32
    return %c0_i32, %c0_i32_0 : i32, i32
  }
  func.func @transform_5(%arg0: i32) -> (i32, i32) {
    %c0_i32 = arith.constant 0 : i32
    %c0_i32_0 = arith.constant 0 : i32
    %c0_i32_1 = arith.constant 0 : i32
    return %c0_i32, %c0_i32_0 : i32, i32
  }
  func.func @transform_6(%arg0: i32) -> (i32, i32) {
    %c0_i32 = arith.constant 0 : i32
    %c0_i32_0 = arith.constant 0 : i32
    %c0_i32_1 = arith.constant 0 : i32
    return %c0_i32, %c0_i32_0 : i32, i32
  }
  func.func @transform_7(%arg0: i32) -> (i32, i32) {
    %c0_i32 = arith.constant 0 : i32
    %c0_i32_0 = arith.constant 0 : i32
    %c0_i32_1 = arith.constant 0 : i32
    return %c0_i32, %c0_i32_0 : i32, i32
  }
  func.func @transform_8(%arg0: i32) -> (i32, i32) {
    %c0_i32 = arith.constant 0 : i32
    %c0_i32_0 = arith.constant 0 : i32
    %c0_i32_1 = arith.constant 0 : i32
    return %c0_i32, %c0_i32_0 : i32, i32
  }
  func.func @transform_9(%arg0: i32) -> (i32, i32) {
    %c0_i32 = arith.constant 0 : i32
    %c0_i32_0 = arith.constant 0 : i32
    %c0_i32_1 = arith.constant 0 : i32
    return %c0_i32, %c0_i32_0 : i32, i32
  }
  func.func @transform_10(%arg0: i32) -> (i32, i32) {
    %c0_i32 = arith.constant 0 : i32
    %c0_i32_0 = arith.constant 0 : i32
    %c0_i32_1 = arith.constant 0 : i32
    return %c0_i32, %c0_i32_0 : i32, i32
  }
  func.func @transform_11(%arg0: i32) -> (i32, i32) {
    %c0_i32 = arith.constant 0 : i32
    %c0_i32_0 = arith.constant 0 : i32
    %c0_i32_1 = arith.constant 0 : i32
    return %c0_i32, %c0_i32_0 : i32, i32
  }
  func.func @transform_12(%arg0: i32) -> (i32, i32) {
    %c0_i32 = arith.constant 0 : i32
    %c0_i32_0 = arith.constant 0 : i32
    return %arg0, %c0_i32 : i32, i32
  }
}

</mosaic_0001>

<bundles_post_ra>
// kernel: tpu_custom_call.1
= control target key start
LH: loop header
LB: loop body
LE: loop exit
PB: predicated region body
PF: predicated region fallthrough
CT: control target
= control target key end

     0   :  { %17 = vsyncpa [#allocation5], 0  ;;  %s693_s0 = inlined_call_operand.hbm [shape: f32[4], index: 0, kind: input, shape index: {}]   ;;  %s694_s1 = inlined_call_operand.hbm [shape: f32[8,16], index: 1, kind: input, shape index: {}]   ;;  %s695_s2 = inlined_call_operand.hbm [shape: f32[16,32], index: 2, kind: input, shape index: {}]   ;;  %s696_s3 = inlined_call_operand.vmem [shape: f32[1,32], index: 3, kind: input, shape index: {}]   ;;  %s697_s4 = inlined_call_operand.hbm [shape: f32[32,32], index: 4, kind: input, shape index: {}]   ;;  %s698_s5 = inlined_call_operand.vmem [shape: f32[1,32], index: 5, kind: input, shape index: {}]   ;;  %s699_s6 = inlined_call_operand.hbm [shape: f32[32,32], index: 6, kind: input, shape index: {}]   ;;  %s700_s7 = inlined_call_operand.vmem [shape: f32[1,32], index: 7, kind: input, shape index: {}]   ;;  %s701_s8 = inlined_call_operand.hbm [shape: f32[32,32], index: 8, kind: input, shape index: {}]   ;;  %s702_s9 = inlined_call_operand.vmem [shape: f32[1,32], index: 9, kind: input, shape index: {}]   ;;  %s703_s10 = inlined_call_operand.hbm [shape: f32[32,128], index: 10, kind: input, shape index: {}]   ;;  %s704_s11 = inlined_call_operand.vmem [shape: f32[1,128], index: 11, kind: input, shape index: {}]   ;;  %s705_s12 = inlined_call_operand.hbm [shape: f32[8,128], index: 12, kind: output, shape index: {}]  }
   0x1   :  { %18 = vsyncpa [#allocation3], 0 }
   0x2   :  { %19 = vsyncpa [#allocation8], 0 }
   0x3   :  { %20 = vsyncpa [#allocation11], 0 }
   0x4   :  { %21 = vsyncpa [#allocation14], 0  ;;  %s47_s23 = sshll.u32 %s695_s2, 4  ;;  %s48_s23 = int_to_ptr.hbm [resolvable:$true] %s47_s23 }
   0x5   :  { %22 = vsyncpa [#allocation4], 0  ;;  %s560_s24 = smov [#allocation7]   ;;  %s77_s28 = sshll.u32 %s699_s6, 4  ;;  %s78_s28 = int_to_ptr.hbm [resolvable:$true] %s77_s28 }
   0x6   :  { %s49_s25 = sshll.u32 %s560_s24, 4  ;;  %s561_s29 = smov 128   ;;  %s50_s25 = int_to_ptr.vmem [resolvable:$true] %s49_s25 }
   0x7   :  { %s562_s30 = smov 8   ;;  %s563_s13 = smov [#allocation10]  }
   0x8   :  { %55 = dma.hbm_to_vmem [thread:$0]  %s48_s23, 256, %s50_s25, [#allocation8], %s561_s29, %s561_s29, %s562_s30  }
   0x9   :  { %s79_s14 = sshll.u32 %s563_s13, 4  ;;  %s28_s16 = sshll.u32 %s693_s0, 4  ;;  %s80_s14 = int_to_ptr.vmem [resolvable:$true] %s79_s14  ;;  %s29_s16 = int_to_ptr.hbm [resolvable:$true] %s28_s16 }
   0xa   :  { %85 = dma.hbm_to_vmem [thread:$0]  %s78_s28, 512, %s80_s14, [#allocation11], %s561_s29, %s561_s29, %s562_s30  }
   0xb   :  { %s37_s18 = sshll.u32 %s694_s1, 4  ;;  %s564_s19 = smov [#allocation2]   ;;  %s38_s18 = int_to_ptr.hbm [resolvable:$true] %s37_s18 }
   0xc   :  { %31 = dma.hbm_to_smem %s29_s16, 16, %s564_s19, [#allocation5]  }
   0xd   :  { %s565_s20 = smov [#allocation6]   ;;  %s62_s24 = sshll.u32 %s697_s4, 4  ;;  %s63_s24 = int_to_ptr.hbm [resolvable:$true] %s62_s24 }
   0xe   :  { %s39_s21 = sshll.u32 %s565_s20, 4  ;;  %s92_s26 = sshll.u32 %s701_s8, 4  ;;  %s40_s21 = int_to_ptr.vmem [resolvable:$true] %s39_s21  ;;  %s93_s26 = int_to_ptr.hbm [resolvable:$true] %s92_s26 }
   0xf   :  { %42 = dma.hbm_to_vmem [thread:$0]  %s38_s18, 128, %s40_s21, [#allocation3]  }
  0x10   :  { %s566_s27 = smov [#allocation9]   ;;  %s567_s1 = smov [#allocation12]  }
  0x11   :  { %s64_s28 = sshll.u32 %s566_s27, 4  ;;  %s94_s13 = sshll.u32 %s567_s1, 4  ;;  %s65_s28 = int_to_ptr.vmem [resolvable:$true] %s64_s28  ;;  %s95_s13 = int_to_ptr.vmem [resolvable:$true] %s94_s13 }
  0x12   :  { %70 = dma.hbm_to_vmem [thread:$0]  %s63_s24, 512, %s65_s28, [#allocation8], %s561_s29, %s561_s29, %s562_s30  }
  0x13   :  { %s107_s4 = sshll.u32 %s703_s10, 4  ;;  %s568_s8 = smov [#allocation13]   ;;  %s108_s4 = int_to_ptr.hbm [resolvable:$true] %s107_s4 }
  0x14   :  { %100 = dma.hbm_to_vmem [thread:$0]  %s93_s26, 512, %s95_s13, [#allocation11], %s561_s29, %s561_s29, %s562_s30  }
  0x15   :  { %s109_s2 = sshll.u32 %s568_s8, 4  ;;  %s110_s2 = int_to_ptr.vmem [resolvable:$true] %s109_s2 }
  0x16   :  { %115 = dma.hbm_to_vmem [thread:$0]  %s108_s4, 512, %s110_s2, [#allocation14], %s561_s29, %s561_s29, %s562_s30  }
  0x17   :  { %548 = dma.done.wait [#allocation5], 16  }
  0x18   :  { %549 = vsyncadd [#allocation5], 4294967280 }
  0x19   :  { %550 = dma.done.wait [#allocation3], 128  }
  0x1a   :  { %551 = vsyncadd [#allocation3], 4294967168 }
  0x1b   :  { %552 = dma.done.wait [#allocation8], 768  }
  0x1c   :  { %553 = vsyncadd [#allocation8], 4294966528 }
  0x1d   :  { %554 = dma.done.wait [#allocation11], 1024  }
  0x1e   :  { %555 = vsyncadd [#allocation11], 4294966272 }
  0x1f   :  { %556 = dma.done.wait [#allocation14], 512  }
  0x20   :  { %557 = vsyncadd [#allocation14], 4294966784 }
  0x21   :  { %146 = sfence }
  0x22   :  { %v149_v0 = vld [vmem:[#allocation7 + $0x8] sm:$0xff]  ;;  %v148_v1 = vld [vmem:[#allocation7] sm:$0xff]  ;;  %v147_v2 = vld [vmem:[#allocation6] sm:$0xff]  ;;  %vm154_vm0 = vcmask 130048   ;;  %s178_s10 = sld [smem:[#allocation2]]  ;;  %vm191_vm2 = vcmask 261120  }
  0x23   :  { %172 = vmatpush.msra.mxu0 %v149_v0  ;;  %v186_v3 = vld [vmem:[#allocation9 + $0x18] sm:$0xff]  ;;  %v185_v4 = vld [vmem:[#allocation9 + $0x10] sm:$0xff]  ;;  %v184_v5 = vld [vmem:[#allocation9 + $0x8] sm:$0xff]  ;;  %s347_s16 = sld [smem:[#allocation2 + $0x1]]  ;;  %s569_s23 = smov [#allocation15]  }
  0x24   :  { %207 = vmatpush.msra.mxu1 %v186_v3  ;;  %v183_v6 = vld [vmem:[#allocation9] sm:$0xff]  ;;  %v223_v7 = vld [vmem:[#allocation10 + $0x18] sm:$0xff]  ;;  %v363_v8 = vld [vmem:[%s696_s3] ss:$0 sm:$0xff]  ;;  %s349_s17 = sld [smem:[#allocation2 + $0x2]]  ;;  %s329_s24 = sshll.u32 %s569_s23, 4  ;;  %s330_s24 = int_to_ptr.vmem [resolvable:$true] %s329_s24 }
  0x25   :  { %173 = vmatpush.msra.mxu0 %v148_v1  ;;  %243 = vmatpush.msra.mxu2 %v223_v7  ;;  %v222_v14 = vld [vmem:[#allocation10 + $0x10] sm:$0xff]  ;;  %v221_v15 = vld [vmem:[#allocation10 + $0x8] sm:$0xff]  ;;  %v220_v16 = vld [vmem:[#allocation10] sm:$0xff]  ;;  %s331_s26 = sshll.u32 %s705_s12, 4  ;;  %s332_s26 = int_to_ptr.hbm [resolvable:$true] %s331_s26 }
  0x26   :  { %345 = vmatmul.msk.f32.vlgmr.msra.gmra.mxu0 %vm154_vm0, %v147_v2  ;;  %208 = vmatpush.msra.mxu1 %v185_v4  ;;  %v259_v17 = vld [vmem:[#allocation12 + $0x18] sm:$0xff]  ;;  %v364_v18 = vld [vmem:[%s698_s5] ss:$0 sm:$0xff]  ;;  %v258_v24 = vld [vmem:[#allocation12 + $0x10] sm:$0xff]  ;;  %s351_s5 = sld [smem:[#allocation2 + $0x3]] }
  0x27   :  { %244 = vmatpush.msra.mxu2 %v222_v14  ;;  %279 = vmatpush.msra.mxu3 %v259_v17  ;;  %v257_v25 = vld [vmem:[#allocation12 + $0x8] sm:$0xff]  ;;  %v256_v26 = vld [vmem:[#allocation12] sm:$0xff]  ;;  %v295_v27 = vld [vmem:[#allocation13 + $0x18] sm:$0xff] }
  0x28   :  { %209 = vmatpush.msra.mxu1 %v184_v5  ;;  %v180_v10 = vstv %s178_s10  ;;  %315 = vmatpush.msrb.mxu0 %v295_v27  ;;  %v365_v28 = vld [vmem:[%s700_s7] ss:$0 sm:$0xff]  ;;  %v294_v34 = vld [vmem:[#allocation13 + $0x10] sm:$0xff]  ;;  %v292_v36 = vld [vmem:[#allocation13] sm:$0xff] }
  0x29   :  { %245 = vmatpush.msra.mxu2 %v221_v15  ;;  %v217_v20 = vstv %s347_s16  ;;  %280 = vmatpush.msra.mxu3 %v258_v24  ;;  %v293_v35 = vld [vmem:[#allocation13 + $0x8] sm:$0xff] }
  0x2a   :  { %210 = vmatpush.msra.mxu1 %v183_v6  ;;  %v253_v30 = vstv %s349_s17  ;;  %316 = vmatpush.msrb.mxu0 %v294_v34  ;;  %v366_v37 = vld [vmem:[%s702_s9] ss:$0 sm:$0xff] }
  0x2b   :  { %246 = vmatpush.msra.mxu2 %v220_v16  ;;  %281 = vmatpush.msra.mxu3 %v257_v25  ;;  %v367_v43 = vld [vmem:[%s704_s11] ss:$0 sm:$0xff] }
  0x2c   :  { %317 = vmatpush.msrb.mxu0 %v293_v35  ;;  %v289_v39 = vstv %s351_s5 }
  0x2d   :  { %282 = vmatpush.msra.mxu3 %v256_v26 }
  0x2e   :  { %318 = vmatpush.msrb.mxu0 %v292_v36 }
  0xa3   :  { %v175_v9 = vpop.f32.mrf.mxu0 }
  0xa4   :  { %v176_v11 = vadd.f32 %v363_v8, %v175_v9 }
  0xa6   :  { %v181_v12 = vmul.f32 %v180_v10, %v176_v11  ;;  %vm179_vm1 = vcmp.ge.f32.partialorder %v176_v11, 0.0 }
  0xa8   :  { %v182_v13 = vsel %vm179_vm1, %v176_v11, %v181_v12 }
  0xa9   :  { %346 = vmatmul.msk.f32.vlgmr.msra.gmra.mxu1 %vm191_vm2, %v182_v13 }
 0x126   :  { %v212_v19 = vpop.f32.mrf.mxu1 }
 0x127   :  { %v213_v21 = vadd.f32 %v364_v18, %v212_v19 }
 0x129   :  { %v218_v22 = vmul.f32 %v217_v20, %v213_v21  ;;  %vm216_vm3 = vcmp.ge.f32.partialorder %v213_v21, 0.0 }
 0x12b   :  { %v219_v23 = vsel %vm216_vm3, %v213_v21, %v218_v22 }
 0x12c   :  { %348 = vmatmul.msk.f32.vlgmr.msra.gmra.mxu2 %vm191_vm2, %v219_v23 }
 0x1af   :  { %v248_v29 = vpop.f32.mrf.mxu2 }
 0x1b0   :  { %v249_v31 = vadd.f32 %v365_v28, %v248_v29 }
 0x1b2   :  { %v254_v32 = vmul.f32 %v253_v30, %v249_v31  ;;  %vm252_vm4 = vcmp.ge.f32.partialorder %v249_v31, 0.0 }
 0x1b4   :  { %v255_v33 = vsel %vm252_vm4, %v249_v31, %v254_v32 }
 0x1b5   :  { %350 = vmatmul.msk.f32.vlgmr.msra.gmra.mxu3 %vm191_vm2, %v255_v33 }
 0x238   :  { %v284_v38 = vpop.f32.mrf.mxu3 }
 0x239   :  { %v285_v40 = vadd.f32 %v366_v37, %v284_v38 }
 0x23b   :  { %vm288_vm5 = vcmp.ge.f32.partialorder %v285_v40, 0.0  ;;  %v290_v41 = vmul.f32 %v289_v39, %v285_v40 }
 0x23d   :  { %v291_v42 = vsel %vm288_vm5, %v285_v40, %v290_v41 }
 0x23e   :  { %352 = vmatmul.msk.f32.vlgmr.msrb.gmra.mxu0 %vm191_vm2, %v291_v42 }
 0x2bb   :  { %v320_v44 = vpop.f32.mrf.mxu0 }
 0x2bc   :  { %v321_v45 = vadd.f32 %v367_v43, %v320_v44 }
 0x2be   :  { %323 = vst [vmem:[#allocation15] sm:$0xff] %v321_v45 }
 0x2bf   :  { %334 = dma.vmem_to_hbm [thread:$0]  %s330_s24, 128, %s332_s26, [#allocation4]  }
 0x2c0   :  { %558 = dma.done.wait [#allocation4], 128  }
 0x2c1   :  { %559 = vsyncadd [#allocation4], 4294967168 }
 0x2c2   :  { %339 = vsyncpa [#allocation3], 1 }
 0x2c3   :  { %340 = vsyncpa [#allocation8], 1 }
 0x2c4   :  { %341 = vsyncpa [#allocation11], 1 }
 0x2c5   :  { %342 = vsyncpa [#allocation14], 1 }
 0x2c6   :  { %343 = vsyncpa [#allocation4], 1 }
 0x2c7   :  { %344 = vsyncpa [#allocation5], 1 }

</bundles_post_ra>
